<compile_context>
chip_gen: v7x
topology: tpu7x:2x2x1
jax: 0.10.0
libtpu: 0.0.40
codegen_flags: <defaults>
</compile_context>

<pallas_src>
import jax
import jax.numpy as jnp
from jax.experimental import pallas as pl
from jax.experimental.pallas import tpu as pltpu


def _round_up(x, m):
    return ((x + m - 1) // m) * m


def _autoencoder_kernel(
    x_ref,                      # (TB, 896)  bf16
    w1_ref, b1_ref,             # (896, 128) bf16, (1, 128) f32
    w2_ref, b2_ref,             # (128, 64)  bf16, (1, 64)  f32
    w34_ref, b34_ref,           # (64, 64)   bf16, (1, 64)  f32   (fused L3*L4)
    w5_ref, b5_ref,             # (64, 128)  bf16, (1, 128) f32
    w6_ref, b6_ref,             # (128, 896) bf16, (1, 896) f32
    out_ref,                    # (TB, 896)  f32
):
    bf16 = jnp.bfloat16
    x = x_ref[...]

    # ---- encoder ----
    h = jnp.dot(x, w1_ref[...], preferred_element_type=jnp.float32) + b1_ref[...]
    h = jnp.maximum(h, 0.0)                                       # Linear(784,128)+ReLU
    h = jnp.dot(h.astype(bf16), w2_ref[...],
                preferred_element_type=jnp.float32) + b2_ref[...]
    h = jnp.maximum(h, 0.0)                                       # Linear(128,64)+ReLU

    # ---- fused Linear(64,latent) -> Linear(latent,64) + ReLU ----
    h = jnp.dot(h.astype(bf16), w34_ref[...],
                preferred_element_type=jnp.float32) + b34_ref[...]
    h = jnp.maximum(h, 0.0)

    # ---- decoder ----
    h = jnp.dot(h.astype(bf16), w5_ref[...],
                preferred_element_type=jnp.float32) + b5_ref[...]
    h = jnp.maximum(h, 0.0)                                       # Linear(64,128)+ReLU
    y = jnp.dot(h.astype(bf16), w6_ref[...],
                preferred_element_type=jnp.float32) + b6_ref[...]
    out_ref[...] = jnp.tanh(y).astype(out_ref.dtype)              # Linear(128,784)+Tanh


def init_autoencoder_params(key, latent_dim):
    """Torch-like nn.Linear init (uniform(-1/sqrt(fan_in), +1/sqrt(fan_in))).
    Weights are stored already transposed as (in_features, out_features)."""
    dims = [(28 * 28, 128), (128, 64), (64, latent_dim),
            (latent_dim, 64), (64, 128), (128, 28 * 28)]
    params = []
    for (fan_in, fan_out) in dims:
        key, kw, kb = jax.random.split(key, 3)
        bound = 1.0 / (fan_in ** 0.5)
        w = jax.random.uniform(kw, (fan_in, fan_out), jnp.float32, -bound, bound)
        b = jax.random.uniform(kb, (1, fan_out), jnp.float32, -bound, bound)
        params.append((w, b))
    return params


def autoencoder_forward(x_nchw, params, *, tb=256):
    """x_nchw: (B, 1, 28, 28) float32 -> (B, 1, 28, 28) float32."""
    B = x_nchw.shape[0]
    F = 28 * 28            # 784
    FP = 896               # 7 * 128: lane-dense padded feature dim
    bf16 = jnp.bfloat16

    (w1, b1), (w2, b2), (w3, b3), (w4, b4), (w5, b5), (w6, b6) = params

    # Fuse the activation-free latent pair: Linear(64,latent) -> Linear(latent,64).
    w34 = w3 @ w4                # (64, 64)  f32
    b34 = b3 @ w4 + b4           # (1, 64)   f32

    # Zero-pad feature dim 784 -> 896 (input cols, W1 rows, W6 cols, b6).
    w1p = jnp.pad(w1, ((0, FP - F), (0, 0)))
    w6p = jnp.pad(w6, ((0, 0), (0, FP - F)))
    b6p = jnp.pad(b6, ((0, 0), (0, FP - F)))

    weights = [w1p.astype(bf16), w2.astype(bf16), w34.astype(bf16),
               w5.astype(bf16), w6p.astype(bf16)]
    biases = [b1, b2, b34, b5, b6p]          # stay f32

    # Batch tiling: tile of up to 256 rows, batch padded to a tile multiple.
    tb_eff = min(tb, _round_up(B, 8))
    b_pad = _round_up(B, tb_eff)
    x = x_nchw.reshape(B, F).astype(jnp.float32)
    x = jnp.pad(x, ((0, b_pad - B), (0, FP - F))).astype(bf16)

    grid = (pl.cdiv(b_pad, tb_eff),)

    def const_spec(arr):
        nd = arr.ndim
        return pl.BlockSpec(arr.shape, lambda i, _nd=nd: (0,) * _nd)

    in_specs = [pl.BlockSpec((tb_eff, FP), lambda i: (i, 0))]
    operands = [x]
    for w, b in zip(weights, biases):
        in_specs += [const_spec(w), const_spec(b)]
        operands += [w, b]

    y = pl.pallas_call(
        _autoencoder_kernel,
        out_shape=jax.ShapeDtypeStruct((b_pad, FP), jnp.float32),
        grid_spec=pltpu.PrefetchScalarGridSpec(
            num_scalar_prefetch=0,
            grid=grid,
            in_specs=in_specs,
            out_specs=pl.BlockSpec((tb_eff, FP), lambda i: (i, 0)),
        ),
        compiler_params=pltpu.CompilerParams(
            dimension_semantics=("parallel",)),
    )(*operands)

    return y[:B, :F].reshape(B, 1, 28, 28)


def _reference_forward(x_nchw, params):
    """Pure-JAX f32 reference matching the PyTorch module exactly."""
    B = x_nchw.shape[0]
    h = x_nchw.reshape(B, 28 * 28).astype(jnp.float32)
    acts = [jax.nn.relu, jax.nn.relu, None, jax.nn.relu, jax.nn.relu, jnp.tanh]
    for (w, b), act in zip(params, acts):
        h = h @ w + b
        if act is not None:
            h = act(h)
    return h.reshape(B, 1, 28, 28)


if __name__ == "__main__":
    latent_dim = 32
    batch = 8

    key = jax.random.PRNGKey(0)
    key_params, key_x = jax.random.split(key)

    params = init_autoencoder_params(key_params, latent_dim)
    x = jax.random.normal(key_x, (batch, 1, 28, 28), jnp.float32)

    out = autoencoder_forward(x, params)
    out = jax.block_until_ready(out)

    assert out.shape == (batch, 1, 28, 28), out.shape
    ref = _reference_forward(x, params)
    # bf16 MXU inputs with f32 accumulation -> relaxed tolerance vs f32 reference.
    assert jnp.allclose(out, ref, atol=5e-2, rtol=5e-2), "mismatch vs reference"

    print("KERNEL_OK")
</pallas_src>

<mosaic_0001>
module attributes {stable_mosaic.version = 11 : i64} {
  func.func @_autoencoder_kernel(%arg0: i32, %arg1: memref<8x896xbf16, #tpu.memory_space<vmem>>, %arg2: memref<896x128xbf16, #tpu.memory_space<vmem>>, %arg3: memref<1x128xf32, #tpu.memory_space<vmem>>, %arg4: memref<128x64xbf16, #tpu.memory_space<vmem>>, %arg5: memref<1x64xf32, #tpu.memory_space<vmem>>, %arg6: memref<64x64xbf16, #tpu.memory_space<vmem>>, %arg7: memref<1x64xf32, #tpu.memory_space<vmem>>, %arg8: memref<64x128xbf16, #tpu.memory_space<vmem>>, %arg9: memref<1x128xf32, #tpu.memory_space<vmem>>, %arg10: memref<128x896xbf16, #tpu.memory_space<vmem>>, %arg11: memref<1x896xf32, #tpu.memory_space<vmem>>, %arg12: memref<8x896xf32, #tpu.memory_space<vmem>>) attributes {dimension_semantics = [#tpu.dimension_semantics<parallel>], iteration_bounds = array<i64: 1>, scalar_prefetch = 0 : i64, scratch_operands = 0 : i64, tpu.core_type = #tpu.core_type<tc>, window_params = [{transform_indices = @transform_0, window_bounds = array<i64: 8, 896>}, {pipeline_mode = #tpu.pipeline_mode<synchronous>, transform_indices = @transform_1, window_bounds = array<i64: 896, 128>}, {pipeline_mode = #tpu.pipeline_mode<synchronous>, transform_indices = @transform_2, window_bounds = array<i64: 1, 128>}, {pipeline_mode = #tpu.pipeline_mode<synchronous>, transform_indices = @transform_3, window_bounds = array<i64: 128, 64>}, {pipeline_mode = #tpu.pipeline_mode<synchronous>, transform_indices = @transform_4, window_bounds = array<i64: 1, 64>}, {pipeline_mode = #tpu.pipeline_mode<synchronous>, transform_indices = @transform_5, window_bounds = array<i64: 64, 64>}, {pipeline_mode = #tpu.pipeline_mode<synchronous>, transform_indices = @transform_6, window_bounds = array<i64: 1, 64>}, {pipeline_mode = #tpu.pipeline_mode<synchronous>, transform_indices = @transform_7, window_bounds = array<i64: 64, 128>}, {pipeline_mode = #tpu.pipeline_mode<synchronous>, transform_indices = @transform_8, window_bounds = array<i64: 1, 128>}, {pipeline_mode = #tpu.pipeline_mode<synchronous>, transform_indices = @transform_9, window_bounds = array<i64: 128, 896>}, {pipeline_mode = #tpu.pipeline_mode<synchronous>, transform_indices = @transform_10, window_bounds = array<i64: 1, 896>}, {transform_indices = @transform_11, window_bounds = array<i64: 8, 896>}]} {
    %c0 = arith.constant 0 : index
    %c0_0 = arith.constant 0 : index
    %0 = vector.load %arg1[%c0, %c0_0] : memref<8x896xbf16, #tpu.memory_space<vmem>>, vector<8x896xbf16>
    %c0_1 = arith.constant 0 : index
    %c0_2 = arith.constant 0 : index
    %1 = vector.load %arg2[%c0_1, %c0_2] : memref<896x128xbf16, #tpu.memory_space<vmem>>, vector<896x128xbf16>
    %cst = arith.constant dense<0.000000e+00> : vector<8x128xf32>
    %2 = tpu.matmul %0, %1, %cst {dimension_numbers = #tpu.dot_dimension_numbers<[1], [0], [0], [1], [0, 0, 1, 1], [], []>} : vector<8x896xbf16>, vector<896x128xbf16>, vector<8x128xf32> -> vector<8x128xf32>
    %c0_3 = arith.constant 0 : index
    %c0_4 = arith.constant 0 : index
    %3 = vector.load %arg3[%c0_3, %c0_4] : memref<1x128xf32, #tpu.memory_space<vmem>>, vector<1x128xf32>
    %4 = vector.broadcast %3 : vector<1x128xf32> to vector<8x128xf32>
    %5 = arith.addf %2, %4 : vector<8x128xf32>
    %cst_5 = arith.constant 0.000000e+00 : f32
    %6 = vector.broadcast %cst_5 : f32 to vector<8x128xf32>
    %7 = arith.maximumf %5, %6 : vector<8x128xf32>
    %8 = arith.truncf %7 : vector<8x128xf32> to vector<8x128xbf16>
    %c0_6 = arith.constant 0 : index
    %c0_7 = arith.constant 0 : index
    %9 = vector.load %arg4[%c0_6, %c0_7] : memref<128x64xbf16, #tpu.memory_space<vmem>>, vector<128x64xbf16>
    %cst_8 = arith.constant dense<0.000000e+00> : vector<8x64xf32>
    %10 = tpu.matmul %8, %9, %cst_8 {dimension_numbers = #tpu.dot_dimension_numbers<[1], [0], [0], [1], [0, 0, 1, 1], [], []>} : vector<8x128xbf16>, vector<128x64xbf16>, vector<8x64xf32> -> vector<8x64xf32>
    %c0_9 = arith.constant 0 : index
    %c0_10 = arith.constant 0 : index
    %11 = vector.load %arg5[%c0_9, %c0_10] : memref<1x64xf32, #tpu.memory_space<vmem>>, vector<1x64xf32>
    %12 = vector.broadcast %11 : vector<1x64xf32> to vector<8x64xf32>
    %13 = arith.addf %10, %12 : vector<8x64xf32>
    %cst_11 = arith.constant 0.000000e+00 : f32
    %14 = vector.broadcast %cst_11 : f32 to vector<8x64xf32>
    %15 = arith.maximumf %13, %14 : vector<8x64xf32>
    %16 = arith.truncf %15 : vector<8x64xf32> to vector<8x64xbf16>
    %c0_12 = arith.constant 0 : index
    %c0_13 = arith.constant 0 : index
    %17 = vector.load %arg6[%c0_12, %c0_13] : memref<64x64xbf16, #tpu.memory_space<vmem>>, vector<64x64xbf16>
    %cst_14 = arith.constant dense<0.000000e+00> : vector<8x64xf32>
    %18 = tpu.matmul %16, %17, %cst_14 {dimension_numbers = #tpu.dot_dimension_numbers<[1], [0], [0], [1], [0, 0, 1, 1], [], []>} : vector<8x64xbf16>, vector<64x64xbf16>, vector<8x64xf32> -> vector<8x64xf32>
    %c0_15 = arith.constant 0 : index
    %c0_16 = arith.constant 0 : index
    %19 = vector.load %arg7[%c0_15, %c0_16] : memref<1x64xf32, #tpu.memory_space<vmem>>, vector<1x64xf32>
    %20 = vector.broadcast %19 : vector<1x64xf32> to vector<8x64xf32>
    %21 = arith.addf %18, %20 : vector<8x64xf32>
    %cst_17 = arith.constant 0.000000e+00 : f32
    %22 = vector.broadcast %cst_17 : f32 to vector<8x64xf32>
    %23 = arith.maximumf %21, %22 : vector<8x64xf32>
    %24 = arith.truncf %23 : vector<8x64xf32> to vector<8x64xbf16>
    %c0_18 = arith.constant 0 : index
    %c0_19 = arith.constant 0 : index
    %25 = vector.load %arg8[%c0_18, %c0_19] : memref<64x128xbf16, #tpu.memory_space<vmem>>, vector<64x128xbf16>
    %cst_20 = arith.constant dense<0.000000e+00> : vector<8x128xf32>
    %26 = tpu.matmul %24, %25, %cst_20 {dimension_numbers = #tpu.dot_dimension_numbers<[1], [0], [0], [1], [0, 0, 1, 1], [], []>} : vector<8x64xbf16>, vector<64x128xbf16>, vector<8x128xf32> -> vector<8x128xf32>
    %c0_21 = arith.constant 0 : index
    %c0_22 = arith.constant 0 : index
    %27 = vector.load %arg9[%c0_21, %c0_22] : memref<1x128xf32, #tpu.memory_space<vmem>>, vector<1x128xf32>
    %28 = vector.broadcast %27 : vector<1x128xf32> to vector<8x128xf32>
    %29 = arith.addf %26, %28 : vector<8x128xf32>
    %cst_23 = arith.constant 0.000000e+00 : f32
    %30 = vector.broadcast %cst_23 : f32 to vector<8x128xf32>
    %31 = arith.maximumf %29, %30 : vector<8x128xf32>
    %32 = arith.truncf %31 : vector<8x128xf32> to vector<8x128xbf16>
    %c0_24 = arith.constant 0 : index
    %c0_25 = arith.constant 0 : index
    %33 = vector.load %arg10[%c0_24, %c0_25] : memref<128x896xbf16, #tpu.memory_space<vmem>>, vector<128x896xbf16>
    %cst_26 = arith.constant dense<0.000000e+00> : vector<8x896xf32>
    %34 = tpu.matmul %32, %33, %cst_26 {dimension_numbers = #tpu.dot_dimension_numbers<[1], [0], [0], [1], [0, 0, 1, 1], [], []>} : vector<8x128xbf16>, vector<128x896xbf16>, vector<8x896xf32> -> vector<8x896xf32>
    %c0_27 = arith.constant 0 : index
    %c0_28 = arith.constant 0 : index
    %35 = vector.load %arg11[%c0_27, %c0_28] : memref<1x896xf32, #tpu.memory_space<vmem>>, vector<1x896xf32>
    %36 = vector.broadcast %35 : vector<1x896xf32> to vector<8x896xf32>
    %37 = arith.addf %34, %36 : vector<8x896xf32>
    %38 = math.tanh %37 : vector<8x896xf32>
    %c0_29 = arith.constant 0 : index
    %c0_30 = arith.constant 0 : index
    %39 = vector.load %arg12[%c0_29, %c0_30] : memref<8x896xf32, #tpu.memory_space<vmem>>, vector<8x896xf32>
    tpu.vector_store %arg12[%c0_29, %c0_30], %38 {strides = array<i32>} : memref<8x896xf32, #tpu.memory_space<vmem>>, vector<8x896xf32>,
    return
  }
  func.func @transform_0(%arg0: i32) -> (i32, i32) {
    %c0_i32 = arith.constant 0 : i32
    %c0_i32_0 = arith.constant 0 : i32
    return %arg0, %c0_i32 : i32, i32
  }
  func.func @transform_1(%arg0: i32) -> (i32, i32) {
    %c0_i32 = arith.constant 0 : i32
    %c0_i32_0 = arith.constant 0 : i32
    %c0_i32_1 = arith.constant 0 : i32
    return %c0_i32, %c0_i32_0 : i32, i32
  }
  func.func @transform_2(%arg0: i32) -> (i32, i32) {
    %c0_i32 = arith.constant 0 : i32
    %c0_i32_0 = arith.constant 0 : i32
    %c0_i32_1 = arith.constant 0 : i32
    return %c0_i32, %c0_i32_0 : i32, i32
  }
  func.func @transform_3(%arg0: i32) -> (i32, i32) {
    %c0_i32 = arith.constant 0 : i32
    %c0_i32_0 = arith.constant 0 : i32
    %c0_i32_1 = arith.constant 0 : i32
    return %c0_i32, %c0_i32_0 : i32, i32
  }
  func.func @transform_4(%arg0: i32) -> (i32, i32) {
    %c0_i32 = arith.constant 0 : i32
    %c0_i32_0 = arith.constant 0 : i32
    %c0_i32_1 = arith.constant 0 : i32
    return %c0_i32, %c0_i32_0 : i32, i32
  }
  func.func @transform_5(%arg0: i32) -> (i32, i32) {
    %c0_i32 = arith.constant 0 : i32
    %c0_i32_0 = arith.constant 0 : i32
    %c0_i32_1 = arith.constant 0 : i32
    return %c0_i32, %c0_i32_0 : i32, i32
  }
  func.func @transform_6(%arg0: i32) -> (i32, i32) {
    %c0_i32 = arith.constant 0 : i32
    %c0_i32_0 = arith.constant 0 : i32
    %c0_i32_1 = arith.constant 0 : i32
    return %c0_i32, %c0_i32_0 : i32, i32
  }
  func.func @transform_7(%arg0: i32) -> (i32, i32) {
    %c0_i32 = arith.constant 0 : i32
    %c0_i32_0 = arith.constant 0 : i32
    %c0_i32_1 = arith.constant 0 : i32
    return %c0_i32, %c0_i32_0 : i32, i32
  }
  func.func @transform_8(%arg0: i32) -> (i32, i32) {
    %c0_i32 = arith.constant 0 : i32
    %c0_i32_0 = arith.constant 0 : i32
    %c0_i32_1 = arith.constant 0 : i32
    return %c0_i32, %c0_i32_0 : i32, i32
  }
  func.func @transform_9(%arg0: i32) -> (i32, i32) {
    %c0_i32 = arith.constant 0 : i32
    %c0_i32_0 = arith.constant 0 : i32
    %c0_i32_1 = arith.constant 0 : i32
    return %c0_i32, %c0_i32_0 : i32, i32
  }
  func.func @transform_10(%arg0: i32) -> (i32, i32) {
    %c0_i32 = arith.constant 0 : i32
    %c0_i32_0 = arith.constant 0 : i32
    %c0_i32_1 = arith.constant 0 : i32
    return %c0_i32, %c0_i32_0 : i32, i32
  }
  func.func @transform_11(%arg0: i32) -> (i32, i32) {
    %c0_i32 = arith.constant 0 : i32
    %c0_i32_0 = arith.constant 0 : i32
    return %arg0, %c0_i32 : i32, i32
  }
}

</mosaic_0001>

<bundles_post_ra>
// kernel: tpu_custom_call.1
= control target key start
LH: loop header
LB: loop body
LE: loop exit
PB: predicated region body
PF: predicated region fallthrough
CT: control target
= control target key end

     0   :  { %16 = vsyncpa [#allocation3], 0  ;;  %s2386_s0 = inlined_call_operand.vmem [shape: bf16[8,896], index: 0, kind: input, shape index: {}]   ;;  %s2387_s1 = inlined_call_operand.hbm [shape: bf16[896,128], index: 1, kind: input, shape index: {}]   ;;  %s2388_s2 = inlined_call_operand.vmem [shape: f32[1,128], index: 2, kind: input, shape index: {}]   ;;  %s2389_s3 = inlined_call_operand.vmem [shape: bf16[128,64], index: 3, kind: input, shape index: {}]   ;;  %s2390_s4 = inlined_call_operand.vmem [shape: f32[1,64], index: 4, kind: input, shape index: {}]   ;;  %s2391_s5 = inlined_call_operand.vmem [shape: bf16[64,64], index: 5, kind: input, shape index: {}]   ;;  %s2392_s6 = inlined_call_operand.vmem [shape: f32[1,64], index: 6, kind: input, shape index: {}]   ;;  %s2393_s7 = inlined_call_operand.vmem [shape: bf16[64,128], index: 7, kind: input, shape index: {}]   ;;  %s2394_s8 = inlined_call_operand.vmem [shape: f32[1,128], index: 8, kind: input, shape index: {}]   ;;  %s2395_s9 = inlined_call_operand.hbm [shape: bf16[128,896], index: 9, kind: input, shape index: {}]   ;;  %s2396_s10 = inlined_call_operand.vmem [shape: f32[1,896], index: 10, kind: input, shape index: {}]   ;;  %s2397_s11 = inlined_call_operand.hbm [shape: f32[8,896], index: 11, kind: output, shape index: {}]  }
   0x1   :  { %17 = vsyncpa [#allocation6], 0 }
   0x2   :  { %18 = vsyncpa [#allocation4], 0  ;;  %s2161_s17 = smov [#allocation2]   ;;  %s2089_s21 = scalar_lea.hbm %s2387_s1, 7168 }
   0x3   :  { %s26_s18 = sshll.u32 %s2161_s17, 4  ;;  %p2090_p0 = scmp.ne.s32.totalorder %s2387_s1, %s2089_s21  ;;  %s27_s18 = int_to_ptr.vmem [resolvable:$true] %s26_s18 }
   0x4   :  { %p2093_p1 = scmp.lt.u32.totalorder %s2089_s21, %s2387_s1 }
   0x6   :  { %p2095_p2 = pnand %p2093_p1, %p2090_p0 }
   0x8   :  { %2098 = shalt.err (!%p2095_p2)
}
   0x9   :  { %s2099_s26 = scalar_lea.vmem %s27_s18, 7168  ;;  %p2104_p4 = scmp.lt.s32.totalorder %s27_s18, %s27_s18 }
   0xa   :  { %p2100_p3 = scmp.ne.s32.totalorder %s27_s18, %s2099_s26  ;;  %p2105_p5 = scmp.lt.s32.totalorder %s2099_s26, %s2099_s26 }
   0xc   :  { %p2106_p6 = por %p2105_p5, %p2104_p4 }
   0xe   :  { %p2107_p7 = pnand %p2106_p6, %p2100_p3 }
  0x10   :  { %2110 = shalt.err (!%p2107_p7)
}
  0x11   :  { %s2162_s27 = smov 64   ;;  %s2163_s28 = smov 4  }
  0x12   :  { %32 = dma.hbm_to_vmem [thread:$0]  %s2387_s1, 7168, %s27_s18, [#allocation3], %s2162_s27, %s2162_s27, %s2163_s28  }
  0x13   :  { %s2164_s12 = smov [#allocation5]   ;;  %s2111_s16 = scalar_lea.hbm %s2395_s9, 7168 }
  0x14   :  { %s52_s13 = sshll.u32 %s2164_s12, 4  ;;  %p2112_p8 = scmp.ne.s32.totalorder %s2395_s9, %s2111_s16  ;;  %s53_s13 = int_to_ptr.vmem [resolvable:$true] %s52_s13 }
  0x15   :  { %p2115_p9 = scmp.lt.u32.totalorder %s2111_s16, %s2395_s9 }
  0x17   :  { %p2117_p10 = pnand %p2115_p9, %p2112_p8 }
  0x19   :  { %2120 = shalt.err (!%p2117_p10)
}
  0x1a   :  { %s2121_s22 = scalar_lea.vmem %s53_s13, 7168  ;;  %p2126_p12 = scmp.lt.s32.totalorder %s53_s13, %s53_s13 }
  0x1b   :  { %p2122_p11 = scmp.ne.s32.totalorder %s53_s13, %s2121_s22  ;;  %p2127_p13 = scmp.lt.s32.totalorder %s2121_s22, %s2121_s22 }
  0x1d   :  { %p2128_p0 = por %p2127_p13, %p2126_p12 }
  0x1f   :  { %p2129_p1 = pnand %p2128_p0, %p2122_p11 }
  0x21   :  { %2132 = shalt.err (!%p2129_p1)
}
  0x22   :  { %s2165_s1 = smov 448   ;;  %s2166_s18 = smov 28  }
  0x23   :  { %58 = dma.hbm_to_vmem [thread:$0]  %s2395_s9, 7168, %s53_s13, [#allocation6], %s2165_s1, %s2165_s1, %s2166_s18  }
  0x24   :  { %2155 = dma.done.wait [#allocation3], 7168  }
  0x25   :  { %2156 = vsyncadd [#allocation3], 4294960128 }
  0x26   :  { %2157 = dma.done.wait [#allocation6], 7168  }
  0x27   :  { %2158 = vsyncadd [#allocation6], 4294960128  ;;  %v1916_v0 = vld [vmem:[#allocation2 + $0x40] sm:$0xff]   ;;  %v1920_v4 = vld [vmem:[#allocation2 + $0x48] sm:$0xff]   ;;  %v2167_v42 = vmov 0.0   ;;  %vm2168_vm0 = vmmov 0  }
  0x28   :  { %v1917_v1 = vld [vmem:[#allocation2] sm:$0xff]   ;;  %1719 = vmatprep.subr.bf16.mxu0 %v1916_v0  ;;  %v1921_v5 = vld [vmem:[#allocation2 + $0x8] sm:$0xff]   ;;  %v1924_v8 = vld [vmem:[#allocation2 + $0x50] sm:$0xff]   ;;  %vm866_vm1 = vcmask 523264  }
  0x29   :  { %v1918_v2 = vld [vmem:[#allocation2 + $0xc0] sm:$0xff]   ;;  %1720 = vmatpush3.bf16.msra.mxu0 %v1917_v1  ;;  %v1922_v6 = vld [vmem:[#allocation2 + $0xc8] sm:$0xff]   ;;  %v1925_v9 = vld [vmem:[#allocation2 + $0x10] sm:$0xff]  }
  0x2a   :  { %v1919_v3 = vld [vmem:[#allocation2 + $0x80] sm:$0xff]   ;;  %1741 = vmatprep.subr.bf16.mxu1 %v1918_v2  ;;  %1721 = vmatprep.subr.bf16.mxu0 %v1920_v4  ;;  %v1923_v7 = vld [vmem:[#allocation2 + $0x88] sm:$0xff]   ;;  %v1926_v10 = vld [vmem:[#allocation2 + $0xd0] sm:$0xff]  }
  0x2b   :  { %1742 = vmatpush3.bf16.msra.mxu1 %v1919_v3  ;;  %v1927_v11 = vld [vmem:[#allocation2 + $0x90] sm:$0xff]   ;;  %v1928_v12 = vld [vmem:[#allocation2 + $0x58] sm:$0xff]   ;;  %v1932_v16 = vld [vmem:[#allocation2 + $0x60] sm:$0xff]  }
  0x2c   :  { %1743 = vmatprep.subr.bf16.mxu1 %v1922_v6  ;;  %v1929_v13 = vld [vmem:[#allocation2 + $0x18] sm:$0xff]   ;;  %v1933_v17 = vld [vmem:[#allocation2 + $0x20] sm:$0xff]   ;;  %v1936_v20 = vld [vmem:[#allocation2 + $0x68] sm:$0xff]  }
  0x2d   :  { %1722 = vmatpush3.bf16.msra.mxu0 %v1921_v5  ;;  %v1930_v14 = vld [vmem:[#allocation2 + $0xd8] sm:$0xff]   ;;  %v1934_v18 = vld [vmem:[#allocation2 + $0xe0] sm:$0xff]   ;;  %v1937_v21 = vld [vmem:[#allocation2 + $0x28] sm:$0xff]  }
  0x2e   :  { %1723 = vmatprep.subr.bf16.mxu0 %v1924_v8  ;;  %v1931_v15 = vld [vmem:[#allocation2 + $0x98] sm:$0xff]   ;;  %v1935_v19 = vld [vmem:[#allocation2 + $0xa0] sm:$0xff]   ;;  %v1938_v22 = vld [vmem:[#allocation2 + $0xe8] sm:$0xff]  }
  0x2f   :  { %1744 = vmatpush3.bf16.msra.mxu1 %v1923_v7  ;;  %v1939_v23 = vld [vmem:[#allocation2 + $0xa8] sm:$0xff]   ;;  %v1940_v24 = vld [vmem:[#allocation2 + $0x70] sm:$0xff]   ;;  %v1944_v28 = vld [vmem:[#allocation2 + $0x78] sm:$0xff]  }
  0x30   :  { %1745 = vmatprep.subr.bf16.mxu1 %v1926_v10  ;;  %v1941_v25 = vld [vmem:[#allocation2 + $0x30] sm:$0xff]   ;;  %v1945_v29 = vld [vmem:[#allocation2 + $0x38] sm:$0xff]   ;;  %v68_v31 = vld [vmem:[%s2386_s0] sm:$0xff] }
  0x31   :  { %1724 = vmatpush3.bf16.msra.mxu0 %v1925_v9  ;;  %v1942_v26 = vld [vmem:[#allocation2 + $0xf0] sm:$0xff]   ;;  %v1946_v30 = vld [vmem:[#allocation2 + $0xf8] sm:$0xff]   ;;  %v1579_v32 = vcombine.low %v68_v31, %v68_v31  ;;  %v1580_v33 = vcombine.high %v68_v31, %v68_v31  ;;  %v1950_v35 = vld [vmem:[#allocation2 + $0x140] sm:$0xff]  }
  0x32   :  { %1725 = vmatprep.subr.bf16.mxu0 %v1928_v12  ;;  %v1943_v27 = vld [vmem:[#allocation2 + $0xb0] sm:$0xff]   ;;  %v1949_v34 = vld [vmem:[#allocation2 + $0xb8] sm:$0xff]   ;;  %v69_v36 = vld [vmem:[%s2386_s0 + $0x8] sm:$0xff] }
  0x33   :  { %1746 = vmatpush3.bf16.msra.mxu1 %v1927_v11  ;;  %584 = vmatprep.mubr.bf16.mxu0 %v1580_v33  ;;  %v1581_v37 = vcombine.low %v69_v36, %v69_v36  ;;  %v1582_v38 = vcombine.high %v69_v36, %v69_v36  ;;  %v1953_v39 = vld [vmem:[#allocation2 + $0x100] sm:$0xff]   ;;  %v1955_v41 = vld [vmem:[#allocation2 + $0x148] sm:$0xff]   ;;  %v1958_v45 = vld [vmem:[#allocation2 + $0x150] sm:$0xff]  }
  0x34   :  { %1747 = vmatprep.subr.bf16.mxu1 %v1930_v14  ;;  %v1954_v40 = vld [vmem:[#allocation2 + $0x180] sm:$0xff]   ;;  %v1956_v43 = vld [vmem:[#allocation2 + $0x108] sm:$0xff]   ;;  %v1959_v46 = vld [vmem:[#allocation2 + $0x110] sm:$0xff]  }
  0x35   :  { %1726 = vmatpush3.bf16.msra.mxu0 %v1929_v13  ;;  %624 = vmatprep.mubr.bf16.mxu1 %v1582_v38  ;;  %v1957_v44 = vld [vmem:[#allocation2 + $0x188] sm:$0xff]   ;;  %v1960_v47 = vld [vmem:[#allocation2 + $0x190] sm:$0xff]   ;;  %v1961_v48 = vld [vmem:[#allocation2 + $0x158] sm:$0xff]  }
  0x36   :  { %1727 = vmatprep.subr.bf16.mxu0 %v1932_v16  ;;  %v1962_v49 = vld [vmem:[#allocation2 + $0x118] sm:$0xff]   ;;  %v1964_v50 = vld [vmem:[#allocation2 + $0x160] sm:$0xff]   ;;  %v1967_v53 = vld [vmem:[#allocation2 + $0x168] sm:$0xff]  }
  0x37   :  { %1748 = vmatpush3.bf16.msra.mxu1 %v1931_v15  ;;  %v1963_v51 = vld [vmem:[#allocation2 + $0x198] sm:$0xff]   ;;  %v1965_v52 = vld [vmem:[#allocation2 + $0x120] sm:$0xff]   ;;  %v1968_v55 = vld [vmem:[#allocation2 + $0x128] sm:$0xff]  }
  0x38   :  { %1749 = vmatprep.subr.bf16.mxu1 %v1934_v18  ;;  %v1966_v54 = vld [vmem:[#allocation2 + $0x1a0] sm:$0xff]   ;;  %v1970_v56 = vld [vmem:[#allocation2 + $0x170] sm:$0xff]   ;;  %v1969_v57 = vld [vmem:[#allocation2 + $0x1a8] sm:$0xff]  }
  0x39   :  { %1728 = vmatpush3.bf16.msra.mxu0 %v1933_v17  ;;  %v1971_v58 = vld [vmem:[#allocation2 + $0x130] sm:$0xff]   ;;  %v1973_v62 = vld [vmem:[#allocation2 + $0x178] sm:$0xff]   ;;  %v1979_v3 = vld [vmem:[%s2389_s3] sm:$0xff]  }
  0x3a   :  { %1729 = vmatprep.subr.bf16.mxu0 %v1936_v20  ;;  %v70_v59 = vld [vmem:[%s2386_s0 + $0x10] sm:$0xff]  ;;  %v1974_v63 = vld [vmem:[#allocation2 + $0x138] sm:$0xff]   ;;  %v1980_v4 = vld [vmem:[%s2389_s3 + $0x8] sm:$0xff]  }
  0x3b   :  { %1750 = vmatpush3.bf16.msra.mxu1 %v1935_v19  ;;  %v1972_v60 = vld [vmem:[#allocation2 + $0x1b0] sm:$0xff]   ;;  %v1584_v61 = vcombine.high %v70_v59, %v70_v59  ;;  %v1977_v0 = vld [vmem:[#allocation2 + $0x1b8] sm:$0xff]   ;;  %v1583_v1 = vcombine.low %v70_v59, %v70_v59  ;;  %v1983_v7 = vld [vmem:[%s2389_s3 + $0x20] sm:$0xff]  }
  0x3c   :  { %1751 = vmatprep.subr.bf16.mxu1 %v1938_v22  ;;  %v1978_v2 = vld [vmem:[%s2386_s0 + $0x18] ss:$0 sps:$4 sm:$0xff]   ;;  %v1981_v5 = vld [vmem:[%s2389_s3 + $0x10] sm:$0xff]   ;;  %v1984_v8 = vld [vmem:[%s2389_s3 + $0x28] sm:$0xff]  }
  0x3d   :  { %1730 = vmatpush3.bf16.msra.mxu0 %v1937_v21  ;;  %v1982_v6 = vld [vmem:[%s2389_s3 + $0x18] sm:$0xff]   ;;  %v1985_v9 = vld [vmem:[%s2389_s3 + $0x30] sm:$0xff]   ;;  %v1987_v11 = vld [vmem:[%s2391_s5] sm:$0xff]  }
  0x3e   :  { %1731 = vmatprep.subr.bf16.mxu0 %v1940_v24  ;;  %v1986_v10 = vld [vmem:[%s2389_s3 + $0x38] sm:$0xff]   ;;  %v1988_v12 = vld [vmem:[%s2391_s5 + $0x8] sm:$0xff]   ;;  %v1578_v14 = vld [vmem:[%s2388_s2] ss:$0 sm:$0xff] }
  0x3f   :  { %1752 = vmatpush3.bf16.msra.mxu1 %v1939_v23  ;;  %v2009_v59 = vld [vmem:[#allocation5 + $0x74] ss:$28 sps:$4 sm:$0xff]  }
  0x40   :  { %1753 = vmatprep.subr.bf16.mxu1 %v1942_v26 }
  0x41   :  { %1732 = vmatpush3.bf16.msra.mxu0 %v1941_v25 }
  0x42   :  { %1733 = vmatprep.subr.bf16.mxu0 %v1944_v28 }
  0x43   :  { %1754 = vmatpush3.bf16.msra.mxu1 %v1943_v27 }
  0x44   :  { %1755 = vmatprep.subr.bf16.mxu1 %v1946_v30 }
  0x45   :  { %1734 = vmatpush3.bf16.msra.mxu0 %v1945_v29 }
  0x46   :  { %1763 = vmatprep.subr.bf16.mxu0 %v1950_v35 }
  0x47   :  { %1756 = vmatpush3.bf16.msra.mxu1 %v1949_v34 }
  0x48   :  { %585 = vmatmul.mubr.bf16.vlgmr.msra.gmra.mrb[0].mxu0 %v1579_v32  ;;  %1822 = vmatprep.subr.bf16.mxu1 %v2167_v42 }
  0x49   :  { %1764 = vmatpush3.bf16.msra.mxu0 %v1953_v39  ;;  %664 = vmatprep.mubr.bf16.mxu0 %v1584_v61  ;;  %v1989_v39 = vld [vmem:[%s2391_s5 + $0x10] sm:$0xff]   ;;  %v2015_v61 = vld [vmem:[#allocation5 + $0xac] ss:$28 sps:$4 sm:$0xff]  }
  0x4a   :  { %625 = vmatmul.mubr.bf16.vlgmr.msra.gmra.mrb[0].mxu1 %v1581_v37  ;;  %1765 = vmatprep.subr.bf16.mxu0 %v1955_v41  ;;  %v1642_v41 = vld [vmem:[%s2390_s4] ss:$0 sm:$0xff] }
  0x4b   :  { %1823 = vmatpush3.bf16.msra.mxu1 %v1954_v40  ;;  %1838 = vmatprep.mubr.msk.bf16.mxu1 %vm2168_vm0, %v2167_v42  ;;  %v1990_v40 = vld [vmem:[%s2391_s5 + $0x18] sm:$0xff]  }
  0x4c   :  { %1824 = vmatprep.subr.bf16.mxu1 %v2167_v42 }
  0x4d   :  { %1766 = vmatpush3.bf16.msra.mxu0 %v1956_v43 }
  0x4e   :  { %1767 = vmatprep.subr.bf16.mxu0 %v1958_v45 }
  0x4f   :  { %1825 = vmatpush3.bf16.msra.mxu1 %v1957_v44 }
  0x50   :  { %1826 = vmatprep.subr.bf16.mxu1 %v2167_v42 }
  0x51   :  { %1768 = vmatpush3.bf16.msra.mxu0 %v1959_v46 }
  0x52   :  { %1769 = vmatprep.subr.bf16.mxu0 %v1961_v48 }
  0x53   :  { %1827 = vmatpush3.bf16.msra.mxu1 %v1960_v47 }
  0x54   :  { %1828 = vmatprep.subr.bf16.mxu1 %v2167_v42 }
  0x55   :  { %1770 = vmatpush3.bf16.msra.mxu0 %v1962_v49  ;;  %v1991_v49 = vld [vmem:[%s2393_s7] sm:$0xff]  }
  0x56   :  { %1771 = vmatprep.subr.bf16.mxu0 %v1964_v50 }
  0x57   :  { %1829 = vmatpush3.bf16.msra.mxu1 %v1963_v51  ;;  %v1992_v51 = vld [vmem:[%s2393_s7 + $0x8] sm:$0xff]  }
  0x58   :  { %1830 = vmatprep.subr.bf16.mxu1 %v2167_v42 }
  0x59   :  { %1772 = vmatpush3.bf16.msra.mxu0 %v1965_v52  ;;  %v1993_v52 = vld [vmem:[%s2393_s7 + $0x10] sm:$0xff]  }
  0x5a   :  { %1773 = vmatprep.subr.bf16.mxu0 %v1967_v53  ;;  %v1994_v53 = vld [vmem:[%s2393_s7 + $0x18] sm:$0xff]  }
  0x5b   :  { %1831 = vmatpush3.bf16.msra.mxu1 %v1966_v54  ;;  %v1995_v54 = vld [vmem:[#allocation5] ss:$28 sps:$4 sm:$0xff]  }
  0x5c   :  { %1832 = vmatprep.subr.bf16.mxu1 %v2167_v42 }
  0x5d   :  { %1774 = vmatpush3.bf16.msra.mxu0 %v1968_v55  ;;  %v1997_v55 = vld [vmem:[#allocation5 + $0x4] ss:$28 sps:$4 sm:$0xff]  }
  0x5e   :  { %1775 = vmatprep.subr.bf16.mxu0 %v1970_v56  ;;  %v2000_v56 = vld [vmem:[#allocation5 + $0xc] ss:$28 sps:$4 sm:$0xff]  }
  0x5f   :  { %1833 = vmatpush3.bf16.msra.mxu1 %v1969_v57  ;;  %v2003_v57 = vld [vmem:[#allocation5 + $0x3c] ss:$28 sps:$4 sm:$0xff]  }
  0x60   :  { %1834 = vmatprep.subr.bf16.mxu1 %v2167_v42 }
  0x61   :  { %1776 = vmatpush3.bf16.msra.mxu0 %v1971_v58  ;;  %v2001_v58 = vld [vmem:[#allocation5 + $0x38] ss:$28 sps:$4 sm:$0xff]  }
  0x62   :  { %1777 = vmatprep.subr.bf16.mxu0 %v1973_v62  ;;  %v2013_v62 = vld [vmem:[#allocation5 + $0xa8] ss:$28 sps:$4 sm:$0xff]  }
  0x63   :  { %1835 = vmatpush3.bf16.msra.mxu1 %v1972_v60  ;;  %v2007_v60 = vld [vmem:[#allocation5 + $0x70] ss:$28 sps:$4 sm:$0xff]  }
  0x64   :  { %1836 = vmatprep.subr.bf16.mxu1 %v2167_v42 }
  0x65   :  { %1778 = vmatpush3.bf16.msra.mxu0 %v1974_v63  ;;  %v2021_v63 = vld [vmem:[#allocation5 + $0xe4] ss:$28 sps:$4 sm:$0xff]  }
  0x66   :  { %1842 = vmatprep.subr.bf16.mxu0 %v2167_v42 }
  0x67   :  { %1837 = vmatpush3.bf16.msra.mxu1 %v1977_v0  ;;  %v2019_v0 = vld [vmem:[#allocation5 + $0xe0] ss:$28 sps:$4 sm:$0xff]  }
  0x68   :  { %665 = vmatmul.mubr.bf16.vlgmr.msra.gmra.mrb[4].mxu0 %v1583_v1  ;;  %1862 = vmatprep.subr.bf16.mxu1 %v2167_v42  ;;  %v2027_v1 = vld [vmem:[#allocation5 + $0x11c] ss:$28 sps:$4 sm:$0xff]  }
  0x69   :  { %1858 = vmatprep.mubr.msk.bf16.mxu0 %vm2168_vm0, %v2167_v42  ;;  %1843 = vmatpush3.bf16.msra.mxu0 %v1979_v3  ;;  %v2033_v3 = vld [vmem:[#allocation5 + $0x154] ss:$28 sps:$4 sm:$0xff]  }
  0x6a   :  { %1839 = vmatmul.mubr.bf16.vlgmr.msra.gmra.mrb[4].mxu1 %v1978_v2  ;;  %1844 = vmatprep.subr.bf16.mxu0 %v2167_v42  ;;  %v2025_v2 = vld [vmem:[#allocation5 + $0x118] ss:$28 sps:$4 sm:$0xff]  }
  0x6b   :  { %1870 = vmatprep.mubr.msk.bf16.mxu1 %vm2168_vm0, %v2167_v42  ;;  %1863 = vmatpush3.bf16.msra.mxu1 %v1987_v11 }
  0x6c   :  { %1864 = vmatprep.subr.bf16.mxu1 %v2167_v42 }
  0x6d   :  { %1845 = vmatpush3.bf16.msra.mxu0 %v1980_v4  ;;  %v2031_v4 = vld [vmem:[#allocation5 + $0x150] ss:$28 sps:$4 sm:$0xff]  }
  0x6e   :  { %1846 = vmatprep.subr.bf16.mxu0 %v2167_v42 }
  0x6f   :  { %1865 = vmatpush3.bf16.msra.mxu1 %v1988_v12  ;;  %v1998_v12 = vld [vmem:[#allocation5 + $0x8] ss:$28 sps:$4 sm:$0xff]  }
  0x70   :  { %1866 = vmatprep.subr.bf16.mxu1 %v2167_v42 }
  0x71   :  { %1847 = vmatpush3.bf16.msra.mxu0 %v1981_v5  ;;  %v1651_v5 = vld [vmem:[%s2392_s6] ss:$0 sm:$0xff] }
  0x72   :  { %1848 = vmatprep.subr.bf16.mxu0 %v2167_v42 }
  0x73   :  { %1867 = vmatpush3.bf16.msra.mxu1 %v1989_v39  ;;  %v2043_v39 = vld [vmem:[#allocation5 + $0x10] ss:$28 sps:$4 sm:$0xff]  }
  0x74   :  { %1868 = vmatprep.subr.bf16.mxu1 %v2167_v42 }
  0x75   :  { %1849 = vmatpush3.bf16.msra.mxu0 %v1982_v6 }
  0x76   :  { %1850 = vmatprep.subr.bf16.mxu0 %v2167_v42 }
  0x77   :  { %1869 = vmatpush3.bf16.msra.mxu1 %v1990_v40  ;;  %v2046_v40 = vld [vmem:[#allocation5 + $0x18] ss:$28 sps:$4 sm:$0xff]  }
  0x78   :  { %1874 = vmatprep.subr.bf16.mxu1 %v2167_v42 }
  0x79   :  { %1851 = vmatpush3.bf16.msra.mxu0 %v1983_v7 }
  0x7a   :  { %1852 = vmatprep.subr.bf16.mxu0 %v2167_v42 }
  0x7d   :  { %1853 = vmatpush3.bf16.msra.mxu0 %v1984_v8 }
  0x7e   :  { %1854 = vmatprep.subr.bf16.mxu0 %v2167_v42 }
  0x81   :  { %1855 = vmatpush3.bf16.msra.mxu0 %v1985_v9 }
  0x82   :  { %1856 = vmatprep.subr.bf16.mxu0 %v2167_v42 }
  0x85   :  { %1857 = vmatpush3.bf16.msra.mxu0 %v1986_v10 }
  0x86   :  { %1385 = vmatprep.subr.bf16.mxu0 %v1997_v55  ;;  %v2065_v55 = vld [vmem:[#allocation5 + $0x12c] ss:$28 sps:$4 sm:$0xff]  }
 0x11b   :  { %v1735_v13 = vpop.f32.mrb[0].mxu0 }
 0x11c   :  { %v1736_v15 = vpop.f32.mrb[1].mxu0 }
 0x11d   :  { %v1737_v16 = vadd.f32 %v1736_v15, %v1735_v13  ;;  %v1738_v17 = vpop.f32.mrb[2].mxu0  ;;  %v1757_v18 = vpop.f32.mrb[0].mxu1  ;;  %v2004_v15 = vld [vmem:[#allocation5 + $0x40] ss:$28 sps:$4 sm:$0xff]  }
 0x11e   :  { %v1739_v19 = vpop.f32.mrb[3].mxu0  ;;  %v1758_v20 = vpop.f32.mrb[1].mxu1  ;;  %v2010_v17 = vld [vmem:[#allocation5 + $0x78] ss:$28 sps:$4 sm:$0xff]  }
 0x11f   :  { %v587_v21 = vadd.f32 %v1737_v16, %v1578_v14  ;;  %v1759_v22 = vadd.f32 %v1758_v20, %v1757_v18  ;;  %v1760_v23 = vpop.f32.mrb[2].mxu1  ;;  %v2006_v14 = vld [vmem:[#allocation5 + $0x44] ss:$28 sps:$4 sm:$0xff]   ;;  %v2012_v16 = vld [vmem:[#allocation5 + $0x7c] ss:$28 sps:$4 sm:$0xff]  }
 0x120   :  { %v1761_v24 = vpop.f32.mrb[3].mxu1  ;;  %v2018_v18 = vld [vmem:[#allocation5 + $0xb4] ss:$28 sps:$4 sm:$0xff]   ;;  %v2024_v20 = vld [vmem:[#allocation5 + $0xec] ss:$28 sps:$4 sm:$0xff]  }
 0x121   :  { %v627_v25 = vadd.f32 %v1759_v22, %v587_v21  ;;  %v2016_v19 = vld [vmem:[#allocation5 + $0xb0] ss:$28 sps:$4 sm:$0xff]   ;;  %v2022_v21 = vld [vmem:[#allocation5 + $0xe8] ss:$28 sps:$4 sm:$0xff]   ;;  %v2028_v23 = vld [vmem:[#allocation5 + $0x120] ss:$28 sps:$4 sm:$0xff]  }
 0x122   :  { %v2030_v22 = vld [vmem:[#allocation5 + $0x124] ss:$28 sps:$4 sm:$0xff]   ;;  %v2036_v24 = vld [vmem:[#allocation5 + $0x15c] ss:$28 sps:$4 sm:$0xff]  }
 0x13b   :  { %v1779_v26 = vpop.f32.mrb[4].mxu0 }
 0x13c   :  { %v1780_v27 = vpop.f32.mrb[5].mxu0 }
 0x13d   :  { %v1781_v28 = vadd.f32 %v1780_v27, %v1779_v26  ;;  %v1782_v29 = vpop.f32.mrb[6].mxu0  ;;  %v706_v30 = vpop.f32.mrb[4].mxu1  ;;  %v2039_v26 = vld [vmem:[#allocation5 + $0x18c] ss:$28 sps:$4 sm:$0xff]   ;;  %v2042_v27 = vld [vmem:[#allocation5 + $0x194] ss:$28 sps:$4 sm:$0xff]  }
 0x13e   :  { %v1783_v31 = vpop.f32.mrb[7].mxu0  ;;  %v1840_v32 = vpop.f32.mrb[5].mxu1  ;;  %v2040_v29 = vld [vmem:[#allocation5 + $0x190] ss:$28 sps:$4 sm:$0xff]  }
 0x13f   :  { %v667_v33 = vadd.f32 %v1781_v28, %v627_v25  ;;  %v709_v34 = vpop.f32.mrb[6].mxu1  ;;  %v2034_v25 = vld [vmem:[#allocation5 + $0x158] ss:$28 sps:$4 sm:$0xff]   ;;  %v2037_v28 = vld [vmem:[#allocation5 + $0x188] ss:$28 sps:$4 sm:$0xff]   ;;  %v2169_v31 = vmov 0  }
 0x140   :  { %v1841_v35 = vpop.f32.mrb[7].mxu1  ;;  %v1657_v32 = vld [vmem:[%s2394_s8] ss:$0 sm:$0xff] }
 0x141   :  { %v707_v36 = vadd.f32 %v706_v30, %v667_v33  ;;  %v2045_v30 = vld [vmem:[#allocation5 + $0x14] ss:$28 sps:$4 sm:$0xff]  }
 0x143   :  { %v712_v37 = vmax.f32 %v707_v36, 0.0 }
 0x145   :  { %v713_v38 = vpack.c.bf16 %v712_v37, %v712_v37 }
 0x147   :  { %1859 = vmatmul.mubr.bf16.vlgmr.msra.gmra.mrb[8].mxu0 %v713_v38 }
 0x148   :  { %1386 = vmatpush1.bf16.msra.mxu0 %v1995_v54  ;;  %1417 = vmatprep.mubr.bf16.mxu0 %v2169_v31  ;;  %v2062_v54 = vld [vmem:[#allocation5 + $0xf8] ss:$28 sps:$4 sm:$0xff]  }
 0x149   :  { %1387 = vmatprep.subr.bf16.mxu0 %v2003_v57  ;;  %v2066_v57 = vld [vmem:[#allocation5 + $0x130] ss:$28 sps:$4 sm:$0xff]  }
 0x14c   :  { %1388 = vmatpush1.bf16.msra.mxu0 %v2001_v58  ;;  %v2069_v58 = vld [vmem:[#allocation5 + $0x164] ss:$28 sps:$4 sm:$0xff]  }
 0x14d   :  { %1389 = vmatprep.subr.bf16.mxu0 %v2009_v59  ;;  %v2067_v59 = vld [vmem:[#allocation5 + $0x160] ss:$28 sps:$4 sm:$0xff]  }
 0x150   :  { %1390 = vmatpush1.bf16.msra.mxu0 %v2007_v60  ;;  %v2070_v60 = vld [vmem:[#allocation5 + $0x168] ss:$28 sps:$4 sm:$0xff]  }
 0x151   :  { %1391 = vmatprep.subr.bf16.mxu0 %v2015_v61  ;;  %v2073_v61 = vld [vmem:[#allocation5 + $0x19c] ss:$28 sps:$4 sm:$0xff]  }
 0x154   :  { %1392 = vmatpush1.bf16.msra.mxu0 %v2013_v62  ;;  %v2071_v62 = vld [vmem:[#allocation5 + $0x198] ss:$28 sps:$4 sm:$0xff]  }
 0x155   :  { %1393 = vmatprep.subr.bf16.mxu0 %v2021_v63  ;;  %v2074_v63 = vld [vmem:[#allocation5 + $0x1a0] ss:$28 sps:$4 sm:$0xff]  }
 0x158   :  { %1394 = vmatpush1.bf16.msra.mxu0 %v2019_v0  ;;  %v1062_v0 = vlaneseq }
 0x159   :  { %1395 = vmatprep.subr.bf16.mxu0 %v2027_v1 }
 0x15a   :  { %v1063_v1 = vshrl.u32 %v1062_v0, 7 }
 0x15c   :  { %1396 = vmatpush1.bf16.msra.mxu0 %v2025_v2  ;;  %v1064_v2 = vsub.s32 0, %v1063_v1 }
 0x15d   :  { %1397 = vmatprep.subr.bf16.mxu0 %v2033_v3  ;;  %v1072_v3 = vsub.s32 2, %v1063_v1 }
 0x160   :  { %1398 = vmatpush1.bf16.msra.mxu0 %v2031_v4  ;;  %v1060_v4 = vld [vmem:[%s2396_s10] sm:$0xff]  ;;  %s2170_s10 = smov [#allocation7]  }
 0x161   :  { %1399 = vmatprep.subr.bf16.mxu0 %v2039_v26  ;;  %v1080_v26 = vsub.s32 4, %v1063_v1  ;;  %s1568_s24 = sshll.u32 %s2170_s10, 4  ;;  %s1569_s24 = int_to_ptr.vmem [resolvable:$true] %s1568_s24 }
 0x162   :  { %s2133_s9 = scalar_lea.vmem %s1569_s24, 896  ;;  %p2138_p3 = scmp.lt.s32.totalorder %s1569_s24, %s1569_s24 }
 0x163   :  { %p2134_p2 = scmp.ne.s32.totalorder %s1569_s24, %s2133_s9  ;;  %p2139_p4 = scmp.lt.s32.totalorder %s2133_s9, %s2133_s9 }
 0x164   :  { %1400 = vmatpush1.bf16.msra.mxu0 %v2037_v28  ;;  %v1084_v28 = vsub.s32 5, %v1063_v1 }
 0x165   :  { %1467 = vmatprep.subr.bf16.mxu0 %v2045_v30  ;;  %p2140_p5 = por %p2139_p4, %p2138_p3 }
 0x167   :  { %p2141_p6 = pnand %p2140_p5, %p2134_p2 }
 0x21a   :  { %v819_v43 = vpop.f32.mrb[8].mxu0 }
 0x21b   :  { %v820_v44 = vadd.f32 %v1642_v41, %v819_v43  ;;  %v1860_v45 = vpop.f32.mrb[9].mxu0  ;;  %v2049_v43 = vld [vmem:[#allocation5 + $0x4c] ss:$28 sps:$4 sm:$0xff]  }
 0x21c   :  { %v822_v46 = vpop.f32.mrb[10].mxu0  ;;  %v2050_v45 = vld [vmem:[#allocation5 + $0x50] ss:$28 sps:$4 sm:$0xff]  }
 0x21d   :  { %v825_v47 = vmax.f32 %v820_v44, 0.0  ;;  %v1861_v48 = vpop.f32.mrb[11].mxu0  ;;  %v2047_v44 = vld [vmem:[#allocation5 + $0x48] ss:$28 sps:$4 sm:$0xff]  }
 0x21e   :  { %v2053_v46 = vld [vmem:[#allocation5 + $0x84] ss:$28 sps:$4 sm:$0xff]  }
 0x21f   :  { %v826_v50 = vpack.c.bf16 %v825_v47, %v825_v47  ;;  %v2051_v47 = vld [vmem:[#allocation5 + $0x80] ss:$28 sps:$4 sm:$0xff]   ;;  %v2054_v48 = vld [vmem:[#allocation5 + $0x88] ss:$28 sps:$4 sm:$0xff]  }
 0x221   :  { %1871 = vmatmul.mubr.msk.bf16.vlgmr.msra.gmra.mrb[8].mxu1 %vm866_vm1, %v826_v50  ;;  %v2055_v50 = vld [vmem:[#allocation5 + $0xb8] ss:$28 sps:$4 sm:$0xff]  }
 0x222   :  { %1875 = vmatpush3.bf16.msra.mxu1 %v1991_v49  ;;  %1882 = vmatprep.mubr.msk.bf16.mxu1 %vm2168_vm0, %v2167_v42  ;;  %v2057_v49 = vld [vmem:[#allocation5 + $0xbc] ss:$28 sps:$4 sm:$0xff]  }
 0x223   :  { %1876 = vmatprep.subr.bf16.mxu1 %v2167_v42 }
 0x226   :  { %1877 = vmatpush3.bf16.msra.mxu1 %v1992_v51  ;;  %v2058_v51 = vld [vmem:[#allocation5 + $0xc0] ss:$28 sps:$4 sm:$0xff]  }
 0x227   :  { %1878 = vmatprep.subr.bf16.mxu1 %v2167_v42 }
 0x22a   :  { %1879 = vmatpush3.bf16.msra.mxu1 %v1993_v52  ;;  %v2061_v52 = vld [vmem:[#allocation5 + $0xf4] ss:$28 sps:$4 sm:$0xff]  }
 0x22b   :  { %1880 = vmatprep.subr.bf16.mxu1 %v2167_v42 }
 0x22e   :  { %1881 = vmatpush3.bf16.msra.mxu1 %v1994_v53  ;;  %v2059_v53 = vld [vmem:[#allocation5 + $0xf0] ss:$28 sps:$4 sm:$0xff]  }
 0x22f   :  { %1426 = vmatprep.subr.bf16.mxu1 %v2000_v56  ;;  %v2063_v56 = vld [vmem:[#allocation5 + $0x128] ss:$28 sps:$4 sm:$0xff]  }
 0x2f4   :  { %v904_v6 = vpop.f32.mrb[8].mxu1 }
 0x2f5   :  { %v905_v7 = vadd.f32 %v1651_v5, %v904_v6  ;;  %v1872_v8 = vpop.f32.mrb[9].mxu1  ;;  %v1068_v5 = vsub.s32 1, %v1063_v1  ;;  %v1076_v6 = vsub.s32 3, %v1063_v1 }
 0x2f6   :  { %v907_v9 = vpop.f32.mrb[10].mxu1  ;;  %v1073_v8 = vrot.slane %v1060_v4, %v1072_v3 }
 0x2f7   :  { %v910_v10 = vmax.f32 %v905_v7, 0.0  ;;  %v1873_v11 = vpop.f32.mrb[11].mxu1  ;;  %v1065_v7 = vrot.slane %v1060_v4, %v1064_v2  ;;  %v1069_v9 = vrot.slane %v1060_v4, %v1068_v5 }
 0x2f9   :  { %v911_v13 = vpack.c.bf16 %v910_v10, %v910_v10  ;;  %v1077_v10 = vrot.slane %v1060_v4, %v1076_v6 }
 0x2fb   :  { %1883 = vmatmul.mubr.msk.bf16.vlgmr.msra.gmra.mrb[12].mxu1 %vm866_vm1, %v911_v13 }
 0x2fc   :  { %1427 = vmatpush1.bf16.msra.mxu1 %v1998_v12  ;;  %1458 = vmatprep.mubr.bf16.mxu1 %v2169_v31 }
 0x2fd   :  { %1428 = vmatprep.subr.bf16.mxu1 %v2006_v14 }
 0x300   :  { %1429 = vmatpush1.bf16.msra.mxu1 %v2004_v15 }
 0x301   :  { %1430 = vmatprep.subr.bf16.mxu1 %v2012_v16 }
 0x304   :  { %1431 = vmatpush1.bf16.msra.mxu1 %v2010_v17 }
 0x305   :  { %1432 = vmatprep.subr.bf16.mxu1 %v2018_v18 }
 0x308   :  { %1433 = vmatpush1.bf16.msra.mxu1 %v2016_v19 }
 0x309   :  { %1434 = vmatprep.subr.bf16.mxu1 %v2024_v20 }
 0x30c   :  { %1435 = vmatpush1.bf16.msra.mxu1 %v2022_v21 }
 0x30d   :  { %1436 = vmatprep.subr.bf16.mxu1 %v2030_v22 }
 0x310   :  { %1437 = vmatpush1.bf16.msra.mxu1 %v2028_v23 }
 0x311   :  { %1438 = vmatprep.subr.bf16.mxu1 %v2036_v24 }
 0x314   :  { %1439 = vmatpush1.bf16.msra.mxu1 %v2034_v25 }
 0x315   :  { %1440 = vmatprep.subr.bf16.mxu1 %v2042_v27  ;;  %v1088_v27 = vsub.s32 6, %v1063_v1 }
 0x317   :  { %v1089_v30 = vrot.slane %v1060_v4, %v1088_v27 }
 0x318   :  { %1441 = vmatpush1.bf16.msra.mxu1 %v2040_v29  ;;  %v1081_v29 = vrot.slane %v1060_v4, %v1080_v26 }
 0x319   :  { %1886 = vmatprep.subr.bf16.mxu1 %v2167_v42 }
 0x3ce   :  { %v988_v33 = vpop.f32.mrb[12].mxu1 }
 0x3cf   :  { %v989_v34 = vadd.f32 %v1657_v32, %v988_v33  ;;  %v1884_v35 = vpop.f32.mrb[13].mxu1 }
 0x3d0   :  { %v991_v36 = vpop.f32.mrb[14].mxu1 }
 0x3d1   :  { %v994_v37 = vmax.f32 %v989_v34, 0.0  ;;  %v1885_v38 = vpop.f32.mrb[15].mxu1 }
 0x3d3   :  { %v995_v41 = vpack.c.bf16 %v994_v37, %v994_v37 }
 0x3d5   :  { %1418 = vmatmul.mubr.bf16.vlgmr.msra.gmra.mrb[12].mxu0 %v995_v41  ;;  %1459 = vmatmul.mubr.bf16.vlgmr.msra.gmra.mrb[16].mxu1 %v995_v41 }
 0x3d6   :  { %1468 = vmatpush1.bf16.msra.mxu0 %v2043_v39  ;;  %1887 = vmatpush3.bf16.msra.mxu1 %v2046_v40 }
 0x3d7   :  { %1469 = vmatprep.subr.bf16.mxu0 %v2049_v43  ;;  %1888 = vmatprep.subr.bf16.mxu1 %v2167_v42 }
 0x3d8   :  { %1499 = vmatprep.mubr.bf16.mxu0 %v2169_v31  ;;  %1902 = vmatprep.mubr.msk.bf16.mxu1 %vm2168_vm0, %v2167_v42  ;;  %v1085_v31 = vrot.slane %v1060_v4, %v1084_v28 }
 0x3da   :  { %1470 = vmatpush1.bf16.msra.mxu0 %v2047_v44  ;;  %1889 = vmatpush3.bf16.msra.mxu1 %v2050_v45 }
 0x3db   :  { %1471 = vmatprep.subr.bf16.mxu0 %v2053_v46  ;;  %1890 = vmatprep.subr.bf16.mxu1 %v2167_v42 }
 0x3de   :  { %1472 = vmatpush1.bf16.msra.mxu0 %v2051_v47  ;;  %1891 = vmatpush3.bf16.msra.mxu1 %v2054_v48 }
 0x3df   :  { %1473 = vmatprep.subr.bf16.mxu0 %v2057_v49  ;;  %1892 = vmatprep.subr.bf16.mxu1 %v2167_v42 }
 0x3e2   :  { %1474 = vmatpush1.bf16.msra.mxu0 %v2055_v50  ;;  %1893 = vmatpush3.bf16.msra.mxu1 %v2058_v51 }
 0x3e3   :  { %1475 = vmatprep.subr.bf16.mxu0 %v2061_v52  ;;  %1894 = vmatprep.subr.bf16.mxu1 %v2167_v42 }
 0x3e6   :  { %1476 = vmatpush1.bf16.msra.mxu0 %v2059_v53  ;;  %1895 = vmatpush3.bf16.msra.mxu1 %v2062_v54 }
 0x3e7   :  { %1477 = vmatprep.subr.bf16.mxu0 %v2065_v55  ;;  %1896 = vmatprep.subr.bf16.mxu1 %v2167_v42 }
 0x3ea   :  { %1478 = vmatpush1.bf16.msra.mxu0 %v2063_v56  ;;  %1897 = vmatpush3.bf16.msra.mxu1 %v2066_v57 }
 0x3eb   :  { %1479 = vmatprep.subr.bf16.mxu0 %v2069_v58  ;;  %1898 = vmatprep.subr.bf16.mxu1 %v2167_v42 }
 0x3ee   :  { %1480 = vmatpush1.bf16.msra.mxu0 %v2067_v59  ;;  %1899 = vmatpush3.bf16.msra.mxu1 %v2070_v60 }
 0x3ef   :  { %1481 = vmatprep.subr.bf16.mxu0 %v2073_v61  ;;  %1900 = vmatprep.subr.bf16.mxu1 %v2167_v42 }
 0x3f2   :  { %1482 = vmatpush1.bf16.msra.mxu0 %v2071_v62  ;;  %1901 = vmatpush3.bf16.msra.mxu1 %v2074_v63 }
 0x3f5   :  { %1500 = vmatmul.mubr.bf16.vlgmr.msra.gmra.mrb[16].mxu0 %v995_v41  ;;  %1903 = vmatmul.mubr.bf16.vlgmr.msra.gmra.mrb[20].mxu1 %v995_v41 }
 0x4a8   :  { %v1419_v11 = vpop.f32.mrb[12].mxu0  ;;  %v1460_v42 = vpop.f32.mrb[16].mxu1 }
 0x4a9   :  { %v1420_v12 = vadd.f32 %v1419_v11, %v1065_v7  ;;  %v1461_v13 = vadd.f32 %v1460_v42, %v1073_v8  ;;  %v1421_v14 = vpop.f32.mrb[13].mxu0  ;;  %v1462_v15 = vpop.f32.mrb[17].mxu1 }
 0x4aa   :  { %v1422_v16 = vadd.f32 %v1421_v14, %v1069_v9  ;;  %v1463_v17 = vadd.f32 %v1462_v15, %v1077_v10  ;;  %v1423_v18 = vpop.f32.mrb[14].mxu0  ;;  %v1464_v19 = vpop.f32.mrb[18].mxu1 }
 0x4ab   :  { %2075 = vtanh.f32 %v1420_v12  ;;  %v1424_v20 = vpop.f32.mrb[15].mxu0  ;;  %v1465_v21 = vpop.f32.mrb[19].mxu1 }
 0x4ac   :  { %2077 = vtanh.f32 %v1461_v13 }
 0x4ad   :  { %2079 = vtanh.f32 %v1422_v16 }
 0x4ae   :  { %2081 = vtanh.f32 %v1463_v17 }
 0x4b5   :  { %v2076_v22 = vpop.eup %2075 }
 0x4b6   :  { %v2078_v23 = vpop.eup %2077  ;;  %1555 = vst [vmem:[#allocation7] sm:$0xff] %v2076_v22 }
 0x4b7   :  { %v2080_v24 = vpop.eup %2079  ;;  %1557 = vst [vmem:[#allocation7 + $0x10] sm:$0xff] %v2078_v23 }
 0x4b8   :  { %v2082_v25 = vpop.eup %2081  ;;  %1556 = vst [vmem:[#allocation7 + $0x8] sm:$0xff] %v2080_v24 }
 0x4b9   :  { %1558 = vst [vmem:[#allocation7 + $0x18] sm:$0xff] %v2082_v25 }
 0x4c8   :  { %v1501_v32 = vpop.f32.mrb[16].mxu0  ;;  %v1542_v33 = vpop.f32.mrb[20].mxu1 }
 0x4c9   :  { %v1502_v34 = vadd.f32 %v1501_v32, %v1081_v29  ;;  %v1543_v35 = vadd.f32 %v1542_v33, %v1089_v30  ;;  %v1503_v36 = vpop.f32.mrb[17].mxu0  ;;  %v1904_v37 = vpop.f32.mrb[21].mxu1 }
 0x4ca   :  { %v1504_v38 = vadd.f32 %v1503_v36, %v1085_v31  ;;  %v1505_v39 = vpop.f32.mrb[18].mxu0  ;;  %v1545_v40 = vpop.f32.mrb[22].mxu1 }
 0x4cb   :  { %2083 = vtanh.f32 %v1502_v34  ;;  %v1506_v41 = vpop.f32.mrb[19].mxu0  ;;  %v1905_v43 = vpop.f32.mrb[23].mxu1 }
 0x4cc   :  { %2085 = vtanh.f32 %v1543_v35 }
 0x4cd   :  { %2087 = vtanh.f32 %v1504_v38 }
 0x4d5   :  { %v2084_v44 = vpop.eup %2083 }
 0x4d6   :  { %v2086_v45 = vpop.eup %2085  ;;  %1559 = vst [vmem:[#allocation7 + $0x20] sm:$0xff] %v2084_v44 }
 0x4d7   :  { %v2088_v46 = vpop.eup %2087  ;;  %1561 = vst [vmem:[#allocation7 + $0x30] sm:$0xff] %v2086_v45 }
 0x4d8   :  { %1560 = vst [vmem:[#allocation7 + $0x28] sm:$0xff] %v2088_v46 }
 0x4d9   :  { %2144 = shalt.err (!%p2141_p6)
}
 0x4da   :  { %s2145_s27 = scalar_lea.hbm %s2397_s11, 896 }
 0x4db   :  { %p2146_p7 = scmp.ne.s32.totalorder %s2397_s11, %s2145_s27  ;;  %p2149_p8 = scmp.lt.u32.totalorder %s2145_s27, %s2397_s11 }
 0x4dd   :  { %p2151_p9 = pnand %p2149_p8, %p2146_p7 }
 0x4df   :  { %2154 = shalt.err (!%p2151_p9)
}
 0x4e0   :  { %1571 = dma.vmem_to_hbm [thread:$0]  %s1569_s24, 896, %s2397_s11, [#allocation4]  }
 0x4e1   :  { %2159 = dma.done.wait [#allocation4], 896  }
 0x4e2   :  { %2160 = vsyncadd [#allocation4], 4294966400 }
 0x4e3   :  { %1575 = vsyncpa [#allocation3], 1 }
 0x4e4   :  { %1576 = vsyncpa [#allocation6], 1 }
 0x4e5   :  { %1577 = vsyncpa [#allocation4], 1 }

</bundles_post_ra>
